<compile_context>
chip_gen: v5e
topology: v5e:2x2
jax: 0.10.0
libtpu: 0.0.40
codegen_flags: <defaults>
</compile_context>

<pallas_src>
import math

import jax
import jax.numpy as jnp
from jax.experimental import pallas as pl
from jax.experimental.pallas import tpu as pltpu


# ----------------------------------------------------------------------------
# Pallas kernel: all B planes of one channel, lane-dense (H, B*W) slab.
# ----------------------------------------------------------------------------
def _ar_circular_kernel(x_ref, arn_ref, ain_ref, fhp_ref, fhc_ref, fwc_ref,
                        o_ref):
    """y = Re( IFFT2( FFT2(x) / A ) ) for all B planes of one channel.

    x_ref  : (H, B*W)  input planes, stacked along the lane axis
    arn_ref: (H, W)    Re(A) / |A|^2   (reciprocal spectrum, precomputed)
    ain_ref: (H, W)    Im(A) / |A|^2
    fhp_ref: (2H, H)   [[Fh_re], [Fh_im]]   row-packed H-DFT matrix
    fhc_ref: (H, 2H)   [ Fh_re | Fh_im ]    col-packed H-DFT matrix
    fwc_ref: (W, 2W)   [ Fw_re | Fw_im ]    col-packed W-DFT matrix
    o_ref  : (H, B*W)
    """
    H, BW = x_ref.shape
    W = arn_ref.shape[-1]
    B = BW // W

    x = x_ref[...].astype(jnp.float32)
    arn = arn_ref[...]
    ain = ain_ref[...]
    fhp = fhp_ref[...]
    fhc = fhc_ref[...]
    fwc = fwc_ref[...]

    # --- forward DFT along H: one packed matmul for all B planes ------------
    # t[:H] = Fh_re @ x   (real part),  t[H:] = Fh_im @ x   (imag part)
    t = jnp.dot(fhp, x, preferred_element_type=jnp.float32)          # (2H, BW)

    # --- per plane: W-side DFT, spectral division, W-side inverse DFT -------
    z_re, z_im = [], []
    for b in range(B):
        tb = t[:, b * W:(b + 1) * W]                                  # (2H, W)
        # packed: [[Tr],[Ti]] @ [Fw_re | Fw_im]
        p = jnp.dot(tb, fwc, preferred_element_type=jnp.float32)      # (2H, 2W)
        x_re = p[:H, :W] - p[H:, W:]          # Tr@Fw_re - Ti@Fw_im
        x_im = p[:H, W:] + p[H:, :W]          # Tr@Fw_im + Ti@Fw_re
        # complex division X / A  (== complex_division(X, A) of the reference);
        # the denominator was folded into arn/ain on the host (f32, exact FFT).
        y_re = x_re * arn + x_im * ain
        y_im = x_im * arn - x_re * ain
        ycat = jnp.concatenate([y_re, y_im], axis=0)                  # (2H, W)
        q = jnp.dot(ycat, fwc, preferred_element_type=jnp.float32)    # (2H, 2W)
        z_re.append(q[:H, :W] + q[H:, W:])    # Re( Y @ conj(Fw) )
        z_im.append(q[H:, :W] - q[:H, W:])    # Im( Y @ conj(Fw) )

    zcat = jnp.concatenate(
        [jnp.concatenate(z_re, axis=1), jnp.concatenate(z_im, axis=1)],
        axis=0)                                                       # (2H, BW)

    # --- inverse DFT along H (real part): one packed matmul, lane-dense -----
    # y = Fh_re @ Z_re + Fh_im @ Z_im = Re( conj(Fh) @ Z )
    y = jnp.dot(fhc, zcat, preferred_element_type=jnp.float32)        # (H, BW)
    o_ref[...] = (y * (1.0 / (H * W))).astype(o_ref.dtype)


# ----------------------------------------------------------------------------
# Host-side wrapper: layout plumbing, constant DFT matrices, pallas_call.
# ----------------------------------------------------------------------------
def _dft_matrices(n):
    k = jnp.arange(n, dtype=jnp.float32)
    ang = (-2.0 * math.pi / n) * jnp.outer(k, k)
    return jnp.cos(ang), jnp.sin(ang)


def ar_circular_fused_pallas(x, a_spec):
    """x: (B, C, H, W) real; a_spec: (C, H, W) complex combined AR spectrum."""
    B, C, H, W = x.shape
    dtype = x.dtype

    # Reciprocal spectrum: 1/A = (Re(A) - i*Im(A)) / |A|^2, precomputed in f32.
    denom = jnp.square(a_spec.real) + jnp.square(a_spec.imag)
    arn = (a_spec.real / denom).astype(jnp.float32)   # (C, H, W)
    ain = (a_spec.imag / denom).astype(jnp.float32)   # (C, H, W)

    fh_re, fh_im = _dft_matrices(H)
    fw_re, fw_im = _dft_matrices(W)
    fh_pack = jnp.concatenate([fh_re, fh_im], axis=0)   # (2H, H)
    fh_cat = jnp.concatenate([fh_re, fh_im], axis=1)    # (H, 2H)
    fw_cat = jnp.concatenate([fw_re, fw_im], axis=1)    # (W, 2W)

    # Lane-dense slab layout: planes of one channel stacked along the last axis.
    xt = jnp.transpose(x, (1, 2, 0, 3)).reshape(C, H, B * W)

    matmul_flops = C * (
        2 * (2 * H) * H * (B * W)                    # H-side forward
        + B * 2 * (2 * (2 * H) * W * (2 * W))        # per-plane W-side stages
        + 2 * H * (2 * H) * (B * W))                 # H-side inverse
    bytes_accessed = 4 * (2 * B * C * H * W          # x in, y out
                          + 2 * C * H * W            # arn, ain
                          + 4 * H * H + 2 * W * W)   # DFT matrices

    out = pl.pallas_call(
        _ar_circular_kernel,
        out_shape=jax.ShapeDtypeStruct((C, H, B * W), dtype),
        grid_spec=pltpu.PrefetchScalarGridSpec(
            num_scalar_prefetch=0,
            grid=(C,),
            in_specs=[
                pl.BlockSpec((None, H, B * W), lambda c: (c, 0, 0)),
                pl.BlockSpec((None, H, W), lambda c: (c, 0, 0)),
                pl.BlockSpec((None, H, W), lambda c: (c, 0, 0)),
                # Constant DFT matrices: index maps don't depend on the grid,
                # so the pipeline fetches them only once.
                pl.BlockSpec((2 * H, H), lambda c: (0, 0)),
                pl.BlockSpec((H, 2 * H), lambda c: (0, 0)),
                pl.BlockSpec((W, 2 * W), lambda c: (0, 0)),
            ],
            out_specs=pl.BlockSpec((None, H, B * W), lambda c: (c, 0, 0)),
        ),
        compiler_params=pltpu.CompilerParams(
            dimension_semantics=("parallel",),        # C >= 2 shards across TCs
            vmem_limit_bytes=64 * 1024 * 1024),
        cost_estimate=pl.CostEstimate(
            flops=matmul_flops, transcendentals=0,
            bytes_accessed=bytes_accessed),
    )(xt, arn, ain, fh_pack, fh_cat, fw_cat)

    return jnp.transpose(out.reshape(C, H, B, W), (2, 0, 1, 3))


# ----------------------------------------------------------------------------
# Plain-JAX glue reproducing the module's parameter processing + K fusion.
# ----------------------------------------------------------------------------
@jax.jit
def autoregressive_circular(x, alpha):
    B, C, H, W = x.shape
    K = alpha.shape[1]
    if K == 0 or H < 2 * K + 1 or W < 2 * K + 1:
        return x

    alpha = jnp.tanh(alpha) / math.sqrt(2)
    c0, c1, c2, c3 = jnp.split(alpha, 4, axis=-1)          # each (C, K, 1)
    cos_t = math.cos(-math.pi / 4)
    sin_t = math.sin(-math.pi / 4)
    a_x_left = c0 * cos_t - c1 * sin_t
    a_x_right = c0 * sin_t + c1 * cos_t
    a_y_left = c2 * cos_t - c3 * sin_t
    a_y_right = c2 * sin_t + c3 * cos_t
    ones = jnp.ones_like(c0)
    a_x = jnp.concatenate(
        [ones, a_x_right, jnp.zeros((C, K, H - 3), alpha.dtype), a_x_left], -1)
    a_y = jnp.concatenate(
        [ones, a_y_right, jnp.zeros((C, K, W - 3), alpha.dtype), a_y_left], -1)
    A = jnp.einsum('tzi,tzj->tzij', a_x, a_y)               # (C, K, H, W)

    # Fuse the K sequential AR passes: each intermediate is exactly real, so a
    # single division by the product of the K kernel spectra is exact.
    a_spec = jnp.prod(jnp.fft.fft2(A), axis=1)              # (C, H, W) complex

    return ar_circular_fused_pallas(x, a_spec)


class AutoRegressiveCircular:
    """JAX/Pallas port of AutoRegressive_circular (forward pass only)."""
    # TODO(synk): custom backward (ar_circular.backward) not implemented.

    def __init__(self, channels, kernel_size=3, alpha=None):
        k = kernel_size // 2
        if alpha is None:
            alpha = jnp.zeros((channels, k, 4), jnp.float32)  # module default
        assert alpha.shape == (channels, k, 4)
        self.alpha = alpha

    def __call__(self, x):
        return autoregressive_circular(x, self.alpha)


# ----------------------------------------------------------------------------
# Reference (plain jnp.fft, literal per-K loop) for a sanity check only.
# ----------------------------------------------------------------------------
def _reference_forward(x, alpha):
    B, C, H, W = x.shape
    K = alpha.shape[1]
    if K == 0 or H < 2 * K + 1 or W < 2 * K + 1:
        return x
    alpha = jnp.tanh(alpha) / math.sqrt(2)
    c0, c1, c2, c3 = jnp.split(alpha, 4, axis=-1)
    cos_t = math.cos(-math.pi / 4)
    sin_t = math.sin(-math.pi / 4)
    a_x = jnp.concatenate([jnp.ones_like(c0), c0 * sin_t + c1 * cos_t,
                           jnp.zeros((C, K, H - 3)), c0 * cos_t - c1 * sin_t], -1)
    a_y = jnp.concatenate([jnp.ones_like(c2), c2 * sin_t + c3 * cos_t,
                           jnp.zeros((C, K, W - 3)), c2 * cos_t - c3 * sin_t], -1)
    A = jnp.einsum('tzi,tzj->tzij', a_x, a_y)
    for i in range(K):
        Xf = jnp.fft.fft2(x)
        Af = jnp.fft.fft2(A[:, i])
        x = jnp.real(jnp.fft.ifft2(Xf / Af[None])).astype(x.dtype)
    return x


if __name__ == "__main__":
    key = jax.random.PRNGKey(0)
    kx, ka = jax.random.split(key)

    B, C, H, W = 2, 4, 16, 16
    x = jax.random.normal(kx, (B, C, H, W), dtype=jnp.float32)

    # The module's zero-init alpha would make the layer an exact identity;
    # use a small deterministic non-zero alpha so the check is meaningful.
    alpha = 0.25 * jax.random.uniform(ka, (C, 1, 4), jnp.float32,
                                      minval=-1.0, maxval=1.0)

    layer = AutoRegressiveCircular(channels=C, kernel_size=3, alpha=alpha)
    y = jax.block_until_ready(layer(x))
    assert y.shape == x.shape and y.dtype == x.dtype

    y_ref = jax.block_until_ready(_reference_forward(x, alpha))
    err = float(jnp.max(jnp.abs(y - y_ref)))
    assert jnp.allclose(y, y_ref, atol=1e-3, rtol=1e-3), (
        "max abs diff = %g" % err)

    print("KERNEL_OK")
</pallas_src>

<mosaic_0001>
module attributes {stable_mosaic.version = 11 : i64} {
  func.func @_ar_circular_kernel(%arg0: i32, %arg1: memref<1x16x32xf32, #tpu.memory_space<vmem>>, %arg2: memref<1x16x16xf32, #tpu.memory_space<vmem>>, %arg3: memref<1x16x16xf32, #tpu.memory_space<vmem>>, %arg4: memref<32x16xf32, #tpu.memory_space<vmem>>, %arg5: memref<16x32xf32, #tpu.memory_space<vmem>>, %arg6: memref<16x32xf32, #tpu.memory_space<vmem>>, %arg7: memref<1x16x32xf32, #tpu.memory_space<vmem>>) attributes {dimension_semantics = [#tpu.dimension_semantics<parallel>], iteration_bounds = array<i64: 4>, scalar_prefetch = 0 : i64, scratch_operands = 0 : i64, tpu.core_type = #tpu.core_type<tc>, window_params = [{transform_indices = @transform_0, window_bounds = array<i64: 1, 16, 32>}, {transform_indices = @transform_1, window_bounds = array<i64: 1, 16, 16>}, {transform_indices = @transform_2, window_bounds = array<i64: 1, 16, 16>}, {pipeline_mode = #tpu.pipeline_mode<synchronous>, transform_indices = @transform_3, window_bounds = array<i64: 32, 16>}, {pipeline_mode = #tpu.pipeline_mode<synchronous>, transform_indices = @transform_4, window_bounds = array<i64: 16, 32>}, {pipeline_mode = #tpu.pipeline_mode<synchronous>, transform_indices = @transform_5, window_bounds = array<i64: 16, 32>}, {transform_indices = @transform_6, window_bounds = array<i64: 1, 16, 32>}]} {
    %c0 = arith.constant 0 : index
    %c0_0 = arith.constant 0 : index
    %c0_1 = arith.constant 0 : index
    %0 = vector.load %arg1[%c0, %c0_0, %c0_1] : memref<1x16x32xf32, #tpu.memory_space<vmem>>, vector<1x16x32xf32>
    %1 = vector.shape_cast %0 : vector<1x16x32xf32> to vector<16x32xf32>
    %c0_2 = arith.constant 0 : index
    %c0_3 = arith.constant 0 : index
    %c0_4 = arith.constant 0 : index
    %2 = vector.load %arg2[%c0_2, %c0_3, %c0_4] : memref<1x16x16xf32, #tpu.memory_space<vmem>>, vector<1x16x16xf32>
    %3 = vector.shape_cast %2 : vector<1x16x16xf32> to vector<16x16xf32>
    %c0_5 = arith.constant 0 : index
    %c0_6 = arith.constant 0 : index
    %c0_7 = arith.constant 0 : index
    %4 = vector.load %arg3[%c0_5, %c0_6, %c0_7] : memref<1x16x16xf32, #tpu.memory_space<vmem>>, vector<1x16x16xf32>
    %5 = vector.shape_cast %4 : vector<1x16x16xf32> to vector<16x16xf32>
    %c0_8 = arith.constant 0 : index
    %c0_9 = arith.constant 0 : index
    %6 = vector.load %arg4[%c0_8, %c0_9] : memref<32x16xf32, #tpu.memory_space<vmem>>, vector<32x16xf32>
    %c0_10 = arith.constant 0 : index
    %c0_11 = arith.constant 0 : index
    %7 = vector.load %arg5[%c0_10, %c0_11] : memref<16x32xf32, #tpu.memory_space<vmem>>, vector<16x32xf32>
    %c0_12 = arith.constant 0 : index
    %c0_13 = arith.constant 0 : index
    %8 = vector.load %arg6[%c0_12, %c0_13] : memref<16x32xf32, #tpu.memory_space<vmem>>, vector<16x32xf32>
    %cst = arith.constant dense<0.000000e+00> : vector<32x32xf32>
    %9 = tpu.matmul %6, %1, %cst {dimension_numbers = #tpu.dot_dimension_numbers<[1], [0], [0], [1], [0, 0, 1, 1], [], []>} : vector<32x16xf32>, vector<16x32xf32>, vector<32x32xf32> -> vector<32x32xf32>
    %10 = vector.extract_strided_slice %9 {offsets = [0, 0], sizes = [32, 16], strides = [1, 1]} : vector<32x32xf32> to vector<32x16xf32>
    %cst_14 = arith.constant dense<0.000000e+00> : vector<32x32xf32>
    %11 = tpu.matmul %10, %8, %cst_14 {dimension_numbers = #tpu.dot_dimension_numbers<[1], [0], [0], [1], [0, 0, 1, 1], [], []>} : vector<32x16xf32>, vector<16x32xf32>, vector<32x32xf32> -> vector<32x32xf32>
    %12 = vector.extract_strided_slice %11 {offsets = [0, 0], sizes = [16, 16], strides = [1, 1]} : vector<32x32xf32> to vector<16x16xf32>
    %13 = vector.extract_strided_slice %11 {offsets = [16, 16], sizes = [16, 16], strides = [1, 1]} : vector<32x32xf32> to vector<16x16xf32>
    %14 = arith.subf %12, %13 : vector<16x16xf32>
    %15 = vector.extract_strided_slice %11 {offsets = [0, 16], sizes = [16, 16], strides = [1, 1]} : vector<32x32xf32> to vector<16x16xf32>
    %16 = vector.extract_strided_slice %11 {offsets = [16, 0], sizes = [16, 16], strides = [1, 1]} : vector<32x32xf32> to vector<16x16xf32>
    %17 = arith.addf %15, %16 : vector<16x16xf32>
    %18 = arith.mulf %14, %3 : vector<16x16xf32>
    %19 = arith.mulf %17, %5 : vector<16x16xf32>
    %20 = arith.addf %18, %19 : vector<16x16xf32>
    %21 = arith.mulf %17, %3 : vector<16x16xf32>
    %22 = arith.mulf %14, %5 : vector<16x16xf32>
    %23 = arith.subf %21, %22 : vector<16x16xf32>
    %24 = tpu.concatenate %20, %23 in 0 : vector<16x16xf32>, vector<16x16xf32> -> vector<32x16xf32>
    %cst_15 = arith.constant dense<0.000000e+00> : vector<32x32xf32>
    %25 = tpu.matmul %24, %8, %cst_15 {dimension_numbers = #tpu.dot_dimension_numbers<[1], [0], [0], [1], [0, 0, 1, 1], [], []>} : vector<32x16xf32>, vector<16x32xf32>, vector<32x32xf32> -> vector<32x32xf32>
    %26 = vector.extract_strided_slice %25 {offsets = [0, 0], sizes = [16, 16], strides = [1, 1]} : vector<32x32xf32> to vector<16x16xf32>
    %27 = vector.extract_strided_slice %25 {offsets = [16, 16], sizes = [16, 16], strides = [1, 1]} : vector<32x32xf32> to vector<16x16xf32>
    %28 = arith.addf %26, %27 : vector<16x16xf32>
    %29 = vector.extract_strided_slice %25 {offsets = [16, 0], sizes = [16, 16], strides = [1, 1]} : vector<32x32xf32> to vector<16x16xf32>
    %30 = vector.extract_strided_slice %25 {offsets = [0, 16], sizes = [16, 16], strides = [1, 1]} : vector<32x32xf32> to vector<16x16xf32>
    %31 = arith.subf %29, %30 : vector<16x16xf32>
    %32 = vector.extract_strided_slice %9 {offsets = [0, 16], sizes = [32, 16], strides = [1, 1]} : vector<32x32xf32> to vector<32x16xf32>
    %cst_16 = arith.constant dense<0.000000e+00> : vector<32x32xf32>
    %33 = tpu.matmul %32, %8, %cst_16 {dimension_numbers = #tpu.dot_dimension_numbers<[1], [0], [0], [1], [0, 0, 1, 1], [], []>} : vector<32x16xf32>, vector<16x32xf32>, vector<32x32xf32> -> vector<32x32xf32>
    %34 = vector.extract_strided_slice %33 {offsets = [0, 0], sizes = [16, 16], strides = [1, 1]} : vector<32x32xf32> to vector<16x16xf32>
    %35 = vector.extract_strided_slice %33 {offsets = [16, 16], sizes = [16, 16], strides = [1, 1]} : vector<32x32xf32> to vector<16x16xf32>
    %36 = arith.subf %34, %35 : vector<16x16xf32>
    %37 = vector.extract_strided_slice %33 {offsets = [0, 16], sizes = [16, 16], strides = [1, 1]} : vector<32x32xf32> to vector<16x16xf32>
    %38 = vector.extract_strided_slice %33 {offsets = [16, 0], sizes = [16, 16], strides = [1, 1]} : vector<32x32xf32> to vector<16x16xf32>
    %39 = arith.addf %37, %38 : vector<16x16xf32>
    %40 = arith.mulf %36, %3 : vector<16x16xf32>
    %41 = arith.mulf %39, %5 : vector<16x16xf32>
    %42 = arith.addf %40, %41 : vector<16x16xf32>
    %43 = arith.mulf %39, %3 : vector<16x16xf32>
    %44 = arith.mulf %36, %5 : vector<16x16xf32>
    %45 = arith.subf %43, %44 : vector<16x16xf32>
    %46 = tpu.concatenate %42, %45 in 0 : vector<16x16xf32>, vector<16x16xf32> -> vector<32x16xf32>
    %cst_17 = arith.constant dense<0.000000e+00> : vector<32x32xf32>
    %47 = tpu.matmul %46, %8, %cst_17 {dimension_numbers = #tpu.dot_dimension_numbers<[1], [0], [0], [1], [0, 0, 1, 1], [], []>} : vector<32x16xf32>, vector<16x32xf32>, vector<32x32xf32> -> vector<32x32xf32>
    %48 = vector.extract_strided_slice %47 {offsets = [0, 0], sizes = [16, 16], strides = [1, 1]} : vector<32x32xf32> to vector<16x16xf32>
    %49 = vector.extract_strided_slice %47 {offsets = [16, 16], sizes = [16, 16], strides = [1, 1]} : vector<32x32xf32> to vector<16x16xf32>
    %50 = arith.addf %48, %49 : vector<16x16xf32>
    %51 = vector.extract_strided_slice %47 {offsets = [16, 0], sizes = [16, 16], strides = [1, 1]} : vector<32x32xf32> to vector<16x16xf32>
    %52 = vector.extract_strided_slice %47 {offsets = [0, 16], sizes = [16, 16], strides = [1, 1]} : vector<32x32xf32> to vector<16x16xf32>
    %53 = arith.subf %51, %52 : vector<16x16xf32>
    %54 = tpu.concatenate %28, %50 in 1 : vector<16x16xf32>, vector<16x16xf32> -> vector<16x32xf32>
    %55 = tpu.concatenate %31, %53 in 1 : vector<16x16xf32>, vector<16x16xf32> -> vector<16x32xf32>
    %56 = tpu.concatenate %54, %55 in 0 : vector<16x32xf32>, vector<16x32xf32> -> vector<32x32xf32>
    %cst_18 = arith.constant dense<0.000000e+00> : vector<16x32xf32>
    %57 = tpu.matmul %7, %56, %cst_18 {dimension_numbers = #tpu.dot_dimension_numbers<[1], [0], [0], [1], [0, 0, 1, 1], [], []>} : vector<16x32xf32>, vector<32x32xf32>, vector<16x32xf32> -> vector<16x32xf32>
    %cst_19 = arith.constant 3.906250e-03 : f32
    %58 = vector.broadcast %cst_19 : f32 to vector<16x32xf32>
    %59 = arith.mulf %57, %58 : vector<16x32xf32>
    %c0_20 = arith.constant 0 : index
    %c0_21 = arith.constant 0 : index
    %c0_22 = arith.constant 0 : index
    %60 = vector.load %arg7[%c0_20, %c0_21, %c0_22] : memref<1x16x32xf32, #tpu.memory_space<vmem>>, vector<1x16x32xf32>
    %61 = vector.shape_cast %60 : vector<1x16x32xf32> to vector<16x32xf32>
    %62 = vector.shape_cast %59 : vector<16x32xf32> to vector<1x16x32xf32>
    tpu.vector_store %arg7[%c0_20, %c0_21, %c0_22], %62 {strides = array<i32>} : memref<1x16x32xf32, #tpu.memory_space<vmem>>, vector<1x16x32xf32>,
    return
  }
  func.func @transform_0(%arg0: i32) -> (i32, i32, i32) {
    %c0_i32 = arith.constant 0 : i32
    %c0_i32_0 = arith.constant 0 : i32
    %c0_i32_1 = arith.constant 0 : i32
    return %arg0, %c0_i32, %c0_i32_0 : i32, i32, i32
  }
  func.func @transform_1(%arg0: i32) -> (i32, i32, i32) {
    %c0_i32 = arith.constant 0 : i32
    %c0_i32_0 = arith.constant 0 : i32
    %c0_i32_1 = arith.constant 0 : i32
    return %arg0, %c0_i32, %c0_i32_0 : i32, i32, i32
  }
  func.func @transform_2(%arg0: i32) -> (i32, i32, i32) {
    %c0_i32 = arith.constant 0 : i32
    %c0_i32_0 = arith.constant 0 : i32
    %c0_i32_1 = arith.constant 0 : i32
    return %arg0, %c0_i32, %c0_i32_0 : i32, i32, i32
  }
  func.func @transform_3(%arg0: i32) -> (i32, i32) {
    %c0_i32 = arith.constant 0 : i32
    %c0_i32_0 = arith.constant 0 : i32
    %c0_i32_1 = arith.constant 0 : i32
    return %c0_i32, %c0_i32_0 : i32, i32
  }
  func.func @transform_4(%arg0: i32) -> (i32, i32) {
    %c0_i32 = arith.constant 0 : i32
    %c0_i32_0 = arith.constant 0 : i32
    %c0_i32_1 = arith.constant 0 : i32
    return %c0_i32, %c0_i32_0 : i32, i32
  }
  func.func @transform_5(%arg0: i32) -> (i32, i32) {
    %c0_i32 = arith.constant 0 : i32
    %c0_i32_0 = arith.constant 0 : i32
    %c0_i32_1 = arith.constant 0 : i32
    return %c0_i32, %c0_i32_0 : i32, i32
  }
  func.func @transform_6(%arg0: i32) -> (i32, i32, i32) {
    %c0_i32 = arith.constant 0 : i32
    %c0_i32_0 = arith.constant 0 : i32
    %c0_i32_1 = arith.constant 0 : i32
    return %arg0, %c0_i32, %c0_i32_0 : i32, i32, i32
  }
}

</mosaic_0001>

<bundles_post_ra>
// kernel: autoregressive_circular.1
= control target key start
LH: loop header
LB: loop body
LE: loop exit
PB: predicated region body
PF: predicated region fallthrough
CT: control target
= control target key end

     0   :  { %s915_s21 = smov 0   ;;  %s1040_s0 = inlined_call_operand.vmem [shape: f32[4,16,32], index: 0, kind: input, shape index: {}]   ;;  %s1041_s1 = inlined_call_operand.vmem [shape: f32[4,16,16], index: 1, kind: input, shape index: {}]   ;;  %s1042_s2 = inlined_call_operand.vmem [shape: f32[4,16,16], index: 2, kind: input, shape index: {}]   ;;  %s1043_s3 = inlined_call_operand.vmem [shape: f32[32,16], index: 3, kind: input, shape index: {}]   ;;  %s1044_s4 = inlined_call_operand.vmem [shape: f32[16,32], index: 4, kind: input, shape index: {}, may-alias: {4,5}]   ;;  %s1045_s5 = inlined_call_operand.vmem [shape: f32[16,32], index: 5, kind: input, shape index: {}, may-alias: {4,5}]   ;;  %s1046_s6 = inlined_call_operand.vmem [shape: f32[4,16,32], index: 6, kind: output, shape index: {}]  }
   0x1 LB: > { %s805_s22 = sadd.s32 4294967295, %s876_s21   ;;  %p809_p0 = scmp.ge.s32.totalorder %s876_s21, 1  ;;  %s876_s21 = sphi %s915_s21, %s16_s21  }
   0x2   : > { %p232_p1 = scmp.lt.s32.totalorder %s876_s21, 5 }
   0x4   : > { %p233_p2 = pnand %p809_p0, %p232_p1 }
   0x5   : > { %p272_p3 = scmp.lt.s32.totalorder (!%p233_p2), %s805_s22, 3  ;;  %s878_s15 = smov (!%p233_p2), 112  }
   0x6   : > { %236 = sbr.rel (%p233_p2) target bundleno = 1245 (0x4dd), region = 44  ;;  %s879_s19 = smov (!%p233_p2), 16  }
   0xb   : > { %v305_v0 = vld [vmem:[%s1045_s5 + $0x8] sm:$0xff]  ;;  %s1048_s22 = smov (!%p272_p3, %s805_s22), 3  ;;  %v298_v3 = vld [vmem:[%s1043_s3] sm:$0xff]  ;;  %vm306_vm0 = vcmask 130048   ;;  %v301_v5 = vld [vmem:[%s1043_s3 + $0x18] sm:$0xff]  ;;  %vm692_vm1 = vcmask 261120  }
   0xc   : > { %374 = vmatpush.msra.mxu1 %v305_v0  ;;  %s926_s25 = sshll.u32 %s1048_s22, 4  ;;  %v299_v4 = vld [vmem:[%s1043_s3 + $0x8] sm:$0xff]  ;;  %v300_v6 = vld [vmem:[%s1043_s3 + $0x10] sm:$0xff]  ;;  %v304_v7 = vld [vmem:[%s1045_s5] sm:$0xff] }
   0xd   : > { %s276_s28 = scalar_lea.vmem %s1040_s0, %s926_s25  ;;  %s286_s18 = scalar_lea.vmem %s1042_s2, %s926_s25 }
   0xe   : > { %v293_v1 = vld [vmem:[%s276_s28 + $0x8] sm:$0xff]  ;;  %v292_v2 = vld [vmem:[%s276_s28] sm:$0xff]  ;;  %375 = vmatpush.msra.mxu1 %v304_v7  ;;  %s281_s23 = scalar_lea.vmem %s1041_s1, %s926_s25  ;;  %s291_s7 = scalar_lea.vmem %s1046_s6, %s926_s25 }
   0xf   : > { %333 = vmatpush.msra.mxu0 %v293_v1  ;;  %846 = vmatpush.msra.mxu2 %v293_v1  ;;  %v296_v16 = vld [vmem:[%s286_s18] sm:$0xff]  ;;  %v297_v17 = vld [vmem:[%s286_s18 + $0x8] sm:$0xff] }
  0x10   : > { %847 = vmatpush.msra.mxu3 %v293_v1  ;;  %v977_v25 = vld [vmem:[%s281_s23] sm:$0xff]  ;;  %v983_v27 = vld [vmem:[%s281_s23 + $0x8] sm:$0xff] }
  0x11   : > { %334 = vmatpush.msra.mxu0 %v292_v2  ;;  %848 = vmatpush.msra.mxu2 %v292_v2 }
  0x12   : > { %818 = vmatmul.msk.f32.vlgmr.msra.gmra.mxu0 %vm306_vm0, %v298_v3  ;;  %819 = vmatmul.msk.f32.vlgmr.msra.gmra.mxu2 %vm306_vm0, %v299_v4 }
  0x13   : > { %849 = vmatpush.msra.mxu3 %v292_v2  ;;  %637 = vmatpush.msrb.mxu0 %v305_v0 }
  0x14   : > { %821 = vmatmul.msk.f32.vlgmr.msra.gmra.mxu3 %vm306_vm0, %v301_v5  ;;  %481 = vmatpush.msrb.mxu2 %v305_v0 }
  0x15   : > { %546 = vmatpush.msrb.mxu3 %v305_v0  ;;  %638 = vmatpush.msrb.mxu0 %v304_v7 }
  0x16   : > { %482 = vmatpush.msrb.mxu2 %v304_v7 }
  0x17   : > { %547 = vmatpush.msrb.mxu3 %v304_v7 }
  0x1a   : > { %820 = vmatmul.msk.f32.gmra.mxu2 %vm306_vm0, %v300_v6 }
  0x8f   : > { %v336_v8 = vpop.f32.mrf.mxu0 }
  0x90   : > { %516 = vrot.lane.b32.xlu0 %v336_v8, %s878_s15  ;;  %822 = vmatmul.msk.f32.vlgmr.msra.gmra.mxu1 %vm306_vm0, %v336_v8 }
  0x95   : > { %v339_v9 = vpop.f32.mrf.mxu2 }
  0x97   : > { %v345_v11 = vpop.f32.mrf.mxu3 }
  0x98   : > { %518 = vrot.lane.b32.xlu0 %v339_v9, %s878_s15  ;;  %823 = vmatmul.msk.f32.gmra.mxu1 %vm306_vm0, %v339_v9 }
  0x9d   : > { %v342_v10 = vpop.f32.mrf.mxu2 }
  0x9e   : > { %520 = vrot.lane.b32.xlu1 %v342_v10, %s878_s15 }
  0xa0   : > { %824 = vmatmul.msk.f32.gmra.mxu1 %vm306_vm0, %v342_v10 }
  0xa6   : > { %522 = vrot.lane.b32.xlu1 %v345_v11, %s878_s15 }
  0xa8   : > { %825 = vmatmul.msk.f32.gmra.mxu1 %vm306_vm0, %v345_v11 }
  0xae   : > { %411 = vrot.lane.b32.xlu1 %v296_v16, %s879_s19 }
  0xb6   : > { %413 = vrot.lane.b32.xlu1 %v297_v17, %s879_s19 }
 0x102   : > { %v517_v12 = vpop.permute.xlu0 %516 }
 0x103   : > { %830 = vmatmul.msk.f32.vlgmr.msrb.gmra.mxu3 %vm306_vm0, %v517_v12 }
 0x10a   : > { %v519_v13 = vpop.permute.xlu0 %518 }
 0x10b   : > { %831 = vmatmul.msk.f32.gmra.mxu3 %vm306_vm0, %v519_v13 }
 0x10d   : > { %v377_v19 = vpop.f32.mrf.mxu1 }
 0x110   : > { %v521_v14 = vpop.permute.xlu1 %520 }
 0x113   : > { %832 = vmatmul.msk.f32.gmra.mxu3 %vm306_vm0, %v521_v14 }
 0x115   : > { %v380_v21 = vpop.f32.mrf.mxu1 }
 0x118   : > { %v523_v15 = vpop.permute.xlu1 %522 }
 0x11b   : > { %833 = vmatmul.msk.f32.gmra.mxu3 %vm306_vm0, %v523_v15 }
 0x11d   : > { %v383_v23 = vpop.f32.mrf.mxu1 }
 0x120   : > { %v412_v31 = vpop.permute.xlu1 %411 }
 0x125   : > { %v386_v26 = vpop.f32.mrf.mxu1 }
 0x128   : > { %v414_v36 = vpop.permute.xlu1 %413 }
 0x186   : > { %v549_v18 = vpop.f32.mrf.mxu3 }
 0x18e   : > { %v552_v20 = vpop.f32.mrf.mxu3 }
 0x196   : > { %v555_v22 = vpop.f32.mrf.mxu3 }
 0x197   : > { %571 = vrot.lane.b32.xlu0 %v555_v22, %s879_s19  ;;  %563 = vrot.lane.b32.xlu2 %v555_v22, %s878_s15 }
 0x19e   : > { %v558_v24 = vpop.f32.mrf.mxu3 }
 0x19f   : > { %565 = vrot.lane.b32.xlu2 %v558_v24, %s878_s15  ;;  %391 = vrot.lane.b32.xlu0 %v383_v23, %s878_s15 }
 0x1a7   : > { %573 = vrot.lane.b32.xlu2 %v558_v24, %s879_s19  ;;  %431 = vrot.lane.b32.xlu0 %v977_v25, %s879_s19 }
 0x1af   : > { %393 = vrot.lane.b32.xlu2 %v386_v26, %s878_s15 }
 0x1b7   : > { %433 = vrot.lane.b32.xlu2 %v983_v27, %s879_s19 }
 0x1bf   : > { %401 = vrot.lane.b32.xlu2 %v386_v26, %s879_s19 }
 0x1f1   : > { %v564_v28 = vpop.permute.xlu2 %563 }
 0x1f2   : > { %v569_v29 = vsub.f32 %v549_v18, %v564_v28 }
 0x1f4   : > { %v595_v30 = vmul.f32 %v569_v29, %v296_v16  ;;  %v579_v1 = vmul.f32 %v569_v29, %v977_v25 }
 0x1f6   : > { %599 = vrot.lane.b32.xlu1 %v595_v30, %s879_s19 }
 0x1f9   : > { %v566_v32 = vpop.permute.xlu2 %565 }
 0x1fa   : > { %v570_v33 = vsub.f32 %v552_v20, %v566_v32 }
 0x1fc   : > { %v596_v34 = vmul.f32 %v570_v33, %v297_v17  ;;  %v580_v5 = vmul.f32 %v570_v33, %v983_v27 }
 0x1fe   : > { %399 = vrot.lane.b32.xlu1 %v383_v23, %s879_s19  ;;  %601 = vrot.lane.b32.xlu0 %v596_v34, %s879_s19 }
 0x201   : > { %v574_v35 = vpop.permute.xlu2 %573 }
 0x202   : > { %v578_v37 = vadd.f32 %v574_v35, %v552_v20 }
 0x204   : > { %v582_v38 = vmul.f32 %v578_v37, %v414_v36 }
 0x206   : > { %587 = vrot.lane.b32.xlu1 %v582_v38, %s878_s15 }
 0x209   : > { %v572_v39 = vpop.permute.xlu0 %571  ;;  %v394_v42 = vpop.permute.xlu2 %393 }
 0x20a   : > { %v577_v40 = vadd.f32 %v572_v39, %v549_v18  ;;  %v398_v43 = vsub.f32 %v380_v21, %v394_v42 }
 0x20c   : > { %v581_v41 = vmul.f32 %v577_v40, %v412_v31  ;;  %v440_v46 = vmul.f32 %v398_v43, %v297_v17 }
 0x20e   : > { %585 = vrot.lane.b32.xlu0 %v581_v41, %s878_s15 }
 0x211   : > { %v392_v44 = vpop.permute.xlu0 %391  ;;  %v434_v48 = vpop.permute.xlu2 %433 }
 0x212   : > { %v397_v45 = vsub.f32 %v377_v19, %v392_v44  ;;  %v594_v55 = vmul.f32 %v578_v37, %v434_v48 }
 0x214   : > { %v439_v47 = vmul.f32 %v397_v45, %v296_v16  ;;  %v407_v12 = vmul.f32 %v397_v45, %v977_v25  ;;  %v408_v16 = vmul.f32 %v398_v43, %v983_v27 }
 0x216   : > { %443 = vrot.lane.b32.xlu2 %v439_v47, %s879_s19  ;;  %445 = vrot.lane.b32.xlu0 %v440_v46, %s879_s19 }
 0x219   : > { %v432_v49 = vpop.permute.xlu0 %431  ;;  %v402_v53 = vpop.permute.xlu2 %401 }
 0x21a   : > { %v593_v50 = vmul.f32 %v577_v40, %v432_v49  ;;  %v406_v54 = vadd.f32 %v402_v53, %v380_v21 }
 0x21c   : > { %v418_v58 = vmul.f32 %v414_v36, %v406_v54  ;;  %v438_v6 = vmul.f32 %v434_v48, %v406_v54 }
 0x268   : > { %v600_v51 = vpop.permute.xlu1 %599 }
 0x269   : > { %v605_v52 = vsub.f32 %v593_v50, %v600_v51 }
 0x26b   : > { %609 = vrot.lane.b32.xlu1 %v605_v52, %s878_s15 }
 0x270   : > { %v400_v56 = vpop.permute.xlu1 %399  ;;  %v602_v57 = vpop.permute.xlu0 %601 }
 0x271   : > { %v405_v59 = vadd.f32 %v400_v56, %v377_v19  ;;  %v606_v60 = vsub.f32 %v594_v55, %v602_v57  ;;  %v444_v63 = vpop.permute.xlu2 %443  ;;  %v302_v55 = vld [vmem:[%s1044_s4] sm:$0xff]  ;;  %v303_v57 = vld [vmem:[%s1044_s4 + $0x8] sm:$0xff] }
 0x273   : > { %v417_v61 = vmul.f32 %v412_v31, %v405_v59  ;;  %611 = vrot.lane.b32.xlu2 %v606_v60, %s878_s15  ;;  %423 = vrot.lane.b32.xlu1 %v418_v58, %s878_s15  ;;  %v437_v62 = vmul.f32 %v432_v49, %v405_v59 }
 0x275   : > { %421 = vrot.lane.b32.xlu0 %v417_v61, %s878_s15  ;;  %v449_v0 = vsub.f32 %v437_v62, %v444_v63 }
 0x278   : > { %v588_v4 = vpop.permute.xlu1 %587 }
 0x279   : > { %v592_v8 = vadd.f32 %v588_v4, %v580_v5 }
 0x27b   : > { %453 = vrot.lane.b32.xlu2 %v449_v0, %s878_s15 }
 0x280   : > { %v586_v2 = vpop.permute.xlu0 %585 }
 0x281   : > { %v591_v3 = vadd.f32 %v586_v2, %v579_v1 }
 0x283   : > { %834 = vmatmul.msk.f32.vlgmr.msrb.gmra.mxu0 %vm306_vm0, %v591_v3 }
 0x288   : > { %v446_v7 = vpop.permute.xlu0 %445 }
 0x289   : > { %v450_v9 = vsub.f32 %v438_v6, %v446_v7 }
 0x28b   : > { %835 = vmatmul.msk.f32.gmra.mxu0 %vm306_vm0, %v592_v8  ;;  %455 = vrot.lane.b32.xlu0 %v450_v9, %s878_s15 }
 0x2cd   : > { %v612_v11 = vpop.permute.xlu2 %611 }
 0x2d5   : > { %v454_v18 = vpop.permute.xlu2 %453 }
 0x2dd   : > { %v610_v10 = vpop.permute.xlu1 %609 }
 0x2de   : > { %836 = vmatmul.msk.f32.gmra.mxu0 %vm306_vm0, %v610_v10 }
 0x2e5   : > { %v424_v15 = vpop.permute.xlu1 %423 }
 0x2e6   : > { %837 = vmatmul.msk.f32.gmra.mxu0 %vm306_vm0, %v612_v11  ;;  %v428_v17 = vadd.f32 %v424_v15, %v408_v16 }
 0x2e7   : > { %v422_v13 = vpop.permute.xlu0 %421 }
 0x2e8   : > { %v427_v14 = vadd.f32 %v422_v13, %v407_v12 }
 0x2ea   : > { %826 = vmatmul.msk.f32.vlgmr.msrb.gmra.mxu2 %vm306_vm0, %v427_v14 }
 0x2f2   : > { %827 = vmatmul.msk.f32.gmra.mxu2 %vm306_vm0, %v428_v17 }
 0x2fa   : > { %828 = vmatmul.msk.f32.gmra.mxu2 %vm306_vm0, %v454_v18 }
 0x2fd   : > { %v456_v20 = vpop.permute.xlu0 %455 }
 0x300   : > { %v640_v19 = vpop.f32.mrf.mxu0 }
 0x301   : > { %664 = vrot.lane.b32.xlu2 %v640_v19, %s878_s15 }
 0x302   : > { %829 = vmatmul.msk.f32.gmra.mxu2 %vm306_vm0, %v456_v20 }
 0x308   : > { %v643_v21 = vpop.f32.mrf.mxu0 }
 0x309   : > { %666 = vrot.lane.b32.xlu1 %v643_v21, %s878_s15 }
 0x35b   : > { %v646_v22 = vpop.f32.mrf.mxu0  ;;  %v665_v26 = vpop.permute.xlu2 %664 }
 0x35c   : > { %654 = vrot.lane.b32.xlu1 %v646_v22, %s878_s15  ;;  %v670_v28 = vsub.f32 %v646_v22, %v665_v26 }
 0x363   : > { %v649_v23 = vpop.f32.mrf.mxu0 }
 0x364   : > { %656 = vrot.lane.b32.xlu0 %v649_v23, %s878_s15 }
 0x36d   : > { %v484_v24 = vpop.f32.mrf.mxu2 }
 0x36e   : > { %508 = vrot.lane.b32.xlu0 %v484_v24, %s878_s15 }
 0x375   : > { %v487_v25 = vpop.f32.mrf.mxu2 }
 0x376   : > { %510 = vrot.lane.b32.xlu2 %v487_v25, %s878_s15 }
 0x37b   : > { %v667_v27 = vpop.permute.xlu1 %666 }
 0x37c   : > { %v671_v29 = vsub.f32 %v649_v23, %v667_v27 }
 0x37d   : > { %v490_v30 = vpop.f32.mrf.mxu2 }
 0x37e   : > { %v860_v31 = vpack.i.bf16 %v670_v28, %v671_v29  ;;  %498 = vrot.lane.b32.xlu0 %v490_v30, %s878_s15 }
 0x380   : > { %861 = vrot.lane.b32.xlu1 %v860_v31, %s879_s19 }
 0x385   : > { %v493_v32 = vpop.f32.mrf.mxu2 }
 0x386   : > { %500 = vrot.lane.b32.xlu2 %v493_v32, %s878_s15 }
 0x3ce   : > { %v655_v33 = vpop.permute.xlu1 %654 }
 0x3cf   : > { %v660_v35 = vadd.f32 %v655_v33, %v640_v19 }
 0x3d0   : > { %v511_v38 = vpop.permute.xlu2 %510 }
 0x3d1   : > { %v515_v41 = vsub.f32 %v493_v32, %v511_v38 }
 0x3d6   : > { %v657_v34 = vpop.permute.xlu0 %656 }
 0x3d7   : > { %v661_v36 = vadd.f32 %v657_v34, %v643_v21 }
 0x3d9   : > { %v865_v37 = vpack.i.bf16 %v660_v35, %v661_v36 }
 0x3db   : > { %866 = vrot.lane.b32.xlu1 %v865_v37, %s879_s19 }
 0x3e0   : > { %v509_v39 = vpop.permute.xlu0 %508  ;;  %v501_v47 = vpop.permute.xlu2 %500 }
 0x3e1   : > { %v514_v44 = vsub.f32 %v490_v30, %v509_v39  ;;  %v505_v50 = vadd.f32 %v501_v47, %v487_v25 }
 0x3f0   : > { %v499_v48 = vpop.permute.xlu0 %498 }
 0x3f1   : > { %v504_v53 = vadd.f32 %v499_v48, %v484_v24 }
 0x3f2   : > { %v862_v40 = vpop.permute.xlu1 %861 }
 0x3f3   : > { %v864_v42 = vunpack.i.h.bf16 %v862_v40  ;;  %v863_v43 = vunpack.i.l.bf16 %v862_v40 }
 0x3f5   : > { %v691_v45 = vsel %vm306_vm0, %v515_v41, %v863_v43  ;;  %v690_v46 = vsel %vm306_vm0, %v514_v44, %v864_v42 }
 0x3f6   : > { %711 = vmatpush.msrb.mxu1 %v691_v45 }
 0x3f8   : > { %712 = vmatpush.msrb.mxu1 %v690_v46 }
 0x44d   : > { %v867_v49 = vpop.permute.xlu1 %866 }
 0x44e   : > { %v869_v51 = vunpack.i.h.bf16 %v867_v49  ;;  %v868_v52 = vunpack.i.l.bf16 %v867_v49 }
 0x450   : > { %v681_v54 = vsel %vm306_vm0, %v505_v50, %v868_v52  ;;  %v680_v56 = vsel %vm306_vm0, %v504_v53, %v869_v51 }
 0x451   : > { %713 = vmatpush.msrb.mxu1 %v681_v54 }
 0x453   : > { %714 = vmatpush.msrb.mxu1 %v680_v56 }
 0x454   : > { %838 = vmatmul.msk.f32.vlgmr.msrb.gmra.mxu1 %vm692_vm1, %v302_v55 }
 0x45c   : > { %839 = vmatmul.msk.f32.gmra.mxu1 %vm692_vm1, %v303_v57 }
 0x4d1   : > { %v716_v58 = vpop.f32.mrf.mxu1 }
 0x4d2   : > { %v722_v59 = vmul.f32 0.00390625, %v716_v58 }
 0x4d4   : > { %724 = vst.msk [vmem:[%s291_s7] sm:$0xff] %vm692_vm1, %v722_v59 }
 0x4d9   : > { %v719_v60 = vpop.f32.mrf.mxu1 }
 0x4da   : > { %v723_v61 = vmul.f32 0.00390625, %v719_v60 }
 0x4dc   : > { %725 = vst.msk [vmem:[%s291_s7 + $0x8] sm:$0xff] %vm692_vm1, %v723_v61 }
 0x4dd PF: > { %s16_s21 = sadd.s32 1, %s876_s21  }
 0x4de   : > { %p13_p4 = scmp.ge.s32.totalorder %s16_s21, 6  }
 0x4e0   :  { %15 = sbr.rel (!%p13_p4) target bundleno = 1 (0x1), region = 80 }

</bundles_post_ra>
